<compile_context>
chip_gen: v7x
topology: tpu7x:2x2x1
jax: 0.10.0
libtpu: 0.0.40
codegen_flags: <defaults>
</compile_context>

<pallas_src>
import functools

import jax
import jax.numpy as jnp
from jax import lax
from jax.experimental import pallas as pl
from jax.experimental.pallas import tpu as pltpu

_EPS = 1e-8              # torch.cosine_similarity default eps
_EPS_SQ = _EPS * _EPS    # max(sqrt(s), eps) == sqrt(max(s, eps**2))


def _cos_kernel(x1_ref, x2_ref, o_ref, *, C, tn, fold, pk):
    """Per-block partial sums of cosine similarity.

    x1_ref, x2_ref: (tn, C, tile_k, 128) VMEM tiles (input dtype).
    o_ref:          (1, 1, pk, 128) f32 partial sums (summed over the tn batch
                    elements of this block, sublane-folded by `fold`).
    """
    tile_k = fold * pk
    zero = jnp.zeros((tile_k, 128), jnp.float32)
    eps2 = jnp.float32(_EPS_SQ)

    def batch_body(b, cos_sum):
        def chan_body(c, carry):
            dot, s1, s2 = carry
            a = x1_ref[b, c].astype(jnp.float32)      # (tile_k, 128)
            v = x2_ref[b, c].astype(jnp.float32)
            return dot + a * v, s1 + a * a, s2 + v * v

        dot, s1, s2 = lax.fori_loop(0, C, chan_body, (zero, zero, zero),
                                    unroll=C <= 16)
        # Split rsqrt: no f32 overflow of s1*s2; rsqrt goes to the EUP slot.
        cos = dot * lax.rsqrt(jnp.maximum(s1, eps2)) * lax.rsqrt(jnp.maximum(s2, eps2))
        return cos_sum + cos

    cos_sum = lax.fori_loop(0, tn, batch_body, zero, unroll=tn <= 4)
    # Fold sublane groups so the written partial stays small and lane-dense.
    o_ref[0, 0] = cos_sum.reshape(fold, pk, 128).sum(axis=0)


def _vmem_budget_and_limit():
    """Generation-dependent input-tile budget and scoped-VMEM limit (bytes)."""
    try:
        cap = pltpu.get_tpu_info().vmem_capacity_bytes
    except Exception:
        cap = 64 * 1024 * 1024                      # conservative (v7x-sized)
    if cap >= 96 * 1024 * 1024:                     # v5e / v6e: 128 MiB physical
        return 40 * 1024 * 1024, 100 * 1024 * 1024
    return 14 * 1024 * 1024, 40 * 1024 * 1024       # v7x: 64 MiB physical


def _choose_tiling(N, K, C, itemsize, budget_bytes):
    """Pick (tn, tile_k, k_pad, num_tiles).

    tile_k is a multiple of 8 unless it equals the (padded) full extent, so the
    (8,128) BlockSpec constraint always holds; K is padded up to k_pad so that
    tile_k divides it exactly (zero rows contribute 0 to the cosine sum).
    """
    bytes_per_row = 4 * C * 128 * itemsize          # 2 inputs x 2 pipeline buffers
    max_rows = max(8, budget_bytes // bytes_per_row)

    if K <= max_rows:
        tile_k, k_pad = K, K                        # full extent: (8,128) rule ok
    else:
        tile_k = max(8, (max_rows // 8) * 8)
        k_pad = pl.cdiv(K, tile_k) * tile_k
    num_tiles = k_pad // tile_k

    # Block several batch elements per grid step when K is small
    # (amortizes the ~0.35us fixed per-step cost, restores large DMAs).
    tn = max(1, min(N, max_rows // tile_k))
    while N % tn != 0:
        tn -= 1
    # Keep >= 2 grid steps so "parallel" axes shard across v7x's 2 TensorCores.
    while tn > 1 and (N // tn) * num_tiles < 2:
        tn //= 2
        while N % tn != 0:
            tn -= 1
    if (N // tn) * num_tiles < 2 and k_pad >= 16:   # N == 1, single tile: split K
        tile_k = max(8, (pl.cdiv(k_pad, 2) // 8) * 8)
        k_pad = pl.cdiv(K, tile_k) * tile_k
        num_tiles = k_pad // tile_k
    return tn, tile_k, k_pad, num_tiles


@jax.jit
def cos_loss(input1, input2):
    """Equivalent of torch: sum(1 - cosine_similarity(input1, input2, dim=1))."""
    assert input1.shape == input2.shape
    N, C, H, W = input1.shape
    HW = H * W
    K = pl.cdiv(HW, 128)

    itemsize = jnp.dtype(input1.dtype).itemsize
    budget, vmem_limit = _vmem_budget_and_limit()
    tn, tile_k, k_pad, num_tiles = _choose_tiling(N, K, C, itemsize, budget)

    # Free reshape (no transpose); pad H*W up to k_pad*128 only when needed.
    flat1 = input1.reshape(N, C, HW)
    flat2 = input2.reshape(N, C, HW)
    pad = k_pad * 128 - HW
    if pad:   # zero rows: dot = s1 = s2 = 0 -> cos = 0 -> contribute nothing
        flat1 = jnp.pad(flat1, ((0, 0), (0, 0), (0, pad)))
        flat2 = jnp.pad(flat2, ((0, 0), (0, 0), (0, pad)))
    x1 = flat1.reshape(N, C, k_pad, 128)
    x2 = flat2.reshape(N, C, k_pad, 128)

    if tile_k % 8 == 0:
        fold, pk = tile_k // 8, 8
    else:                      # tile_k == k_pad (full extent, possibly < 8 rows)
        fold, pk = 1, tile_k

    kernel = functools.partial(_cos_kernel, C=C, tn=tn, fold=fold, pk=pk)

    grid_n = N // tn
    cost = pl.CostEstimate(
        flops=6 * N * C * HW + 6 * N * HW,
        transcendentals=2 * N * HW,
        bytes_accessed=2 * N * C * HW * itemsize + grid_n * num_tiles * pk * 128 * 4,
    )

    partials = pl.pallas_call(
        kernel,
        out_shape=jax.ShapeDtypeStruct((grid_n, num_tiles, pk, 128), jnp.float32),
        grid_spec=pltpu.PrefetchScalarGridSpec(
            num_scalar_prefetch=0,
            grid=(grid_n, num_tiles),
            in_specs=[
                pl.BlockSpec((tn, C, tile_k, 128), lambda n, j: (n, 0, j, 0)),
                pl.BlockSpec((tn, C, tile_k, 128), lambda n, j: (n, 0, j, 0)),
            ],
            out_specs=pl.BlockSpec((1, 1, pk, 128), lambda n, j: (n, j, 0, 0)),
        ),
        compiler_params=pltpu.CompilerParams(
            dimension_semantics=("parallel", "parallel"),
            vmem_limit_bytes=vmem_limit,
        ),
        cost_estimate=cost,
    )(x1, x2)

    # sum(1 - cos) over the N*H*W real points; padded rows contribute 0 cosine.
    return jnp.float32(N * HW) - jnp.sum(partials)


def _reference(input1, input2):
    # Pure-JAX reference mirroring torch.cosine_similarity semantics.
    dot = jnp.sum(input1 * input2, axis=1)
    n1 = jnp.sqrt(jnp.sum(input1 * input1, axis=1))
    n2 = jnp.sqrt(jnp.sum(input2 * input2, axis=1))
    cos_sim = dot / (jnp.maximum(n1, _EPS) * jnp.maximum(n2, _EPS))
    return jnp.sum(1.0 - cos_sim)


if __name__ == "__main__":
    key = jax.random.PRNGKey(0)
    k1, k2 = jax.random.split(key)
    shape = (2, 4, 16, 16)  # N, C, H, W
    input1 = jax.random.normal(k1, shape, dtype=jnp.float32)
    input2 = jax.random.normal(k2, shape, dtype=jnp.float32)

    result = cos_loss(input1, input2)
    jax.block_until_ready(result)

    ref = _reference(input1, input2)
    assert jnp.allclose(result, ref, rtol=1e-5, atol=1e-5), (result, ref)

    print("KERNEL_OK")
</pallas_src>

<mosaic_0001>
module attributes {stable_mosaic.version = 11 : i64} {
  func.func @_cos_kernel(%arg0: i32, %arg1: i32, %arg2: memref<1x4x2x128xf32, #tpu.memory_space<vmem>>, %arg3: memref<1x4x2x128xf32, #tpu.memory_space<vmem>>, %arg4: memref<1x1x2x128xf32, #tpu.memory_space<vmem>>) attributes {dimension_semantics = [#tpu.dimension_semantics<parallel>, #tpu.dimension_semantics<parallel>], iteration_bounds = array<i64: 2, 1>, scalar_prefetch = 0 : i64, scratch_operands = 0 : i64, tpu.core_type = #tpu.core_type<tc>, window_params = [{transform_indices = @transform_0, window_bounds = array<i64: 1, 4, 2, 128>}, {transform_indices = @transform_1, window_bounds = array<i64: 1, 4, 2, 128>}, {transform_indices = @transform_2, window_bounds = array<i64: 1, 1, 2, 128>}]} {
    %cst = arith.constant 0.000000e+00 : f32
    %0 = vector.broadcast %cst : f32 to vector<2x128xf32>
    %cst_0 = arith.constant 1.000000e-16 : f32
    %c0_i32 = arith.constant 0 : i32
    %c0_i32_1 = arith.constant 0 : i32
    %1 = arith.index_cast %c0_i32 : i32 to index
    %2 = arith.index_cast %c0_i32_1 : i32 to index
    %c0 = arith.constant 0 : index
    %c0_2 = arith.constant 0 : index
    %3 = vector.load %arg2[%1, %2, %c0, %c0_2] : memref<1x4x2x128xf32, #tpu.memory_space<vmem>>, vector<1x1x2x128xf32>
    %4 = vector.shape_cast %3 : vector<1x1x2x128xf32> to vector<2x128xf32>
    %5 = arith.index_cast %c0_i32 : i32 to index
    %6 = arith.index_cast %c0_i32_1 : i32 to index
    %c0_3 = arith.constant 0 : index
    %c0_4 = arith.constant 0 : index
    %7 = vector.load %arg3[%5, %6, %c0_3, %c0_4] : memref<1x4x2x128xf32, #tpu.memory_space<vmem>>, vector<1x1x2x128xf32>
    %8 = vector.shape_cast %7 : vector<1x1x2x128xf32> to vector<2x128xf32>
    %9 = arith.mulf %4, %8 : vector<2x128xf32>
    %10 = arith.addf %0, %9 : vector<2x128xf32>
    %11 = arith.mulf %4, %4 : vector<2x128xf32>
    %12 = arith.addf %0, %11 : vector<2x128xf32>
    %13 = arith.mulf %8, %8 : vector<2x128xf32>
    %14 = arith.addf %0, %13 : vector<2x128xf32>
    %c1_i32 = arith.constant 1 : i32
    %15 = arith.index_cast %c0_i32 : i32 to index
    %16 = arith.index_cast %c1_i32 : i32 to index
    %c0_5 = arith.constant 0 : index
    %c0_6 = arith.constant 0 : index
    %17 = vector.load %arg2[%15, %16, %c0_5, %c0_6] : memref<1x4x2x128xf32, #tpu.memory_space<vmem>>, vector<1x1x2x128xf32>
    %18 = vector.shape_cast %17 : vector<1x1x2x128xf32> to vector<2x128xf32>
    %19 = arith.index_cast %c0_i32 : i32 to index
    %20 = arith.index_cast %c1_i32 : i32 to index
    %c0_7 = arith.constant 0 : index
    %c0_8 = arith.constant 0 : index
    %21 = vector.load %arg3[%19, %20, %c0_7, %c0_8] : memref<1x4x2x128xf32, #tpu.memory_space<vmem>>, vector<1x1x2x128xf32>
    %22 = vector.shape_cast %21 : vector<1x1x2x128xf32> to vector<2x128xf32>
    %23 = arith.mulf %18, %22 : vector<2x128xf32>
    %24 = arith.addf %10, %23 : vector<2x128xf32>
    %25 = arith.mulf %18, %18 : vector<2x128xf32>
    %26 = arith.addf %12, %25 : vector<2x128xf32>
    %27 = arith.mulf %22, %22 : vector<2x128xf32>
    %28 = arith.addf %14, %27 : vector<2x128xf32>
    %c2_i32 = arith.constant 2 : i32
    %29 = arith.index_cast %c0_i32 : i32 to index
    %30 = arith.index_cast %c2_i32 : i32 to index
    %c0_9 = arith.constant 0 : index
    %c0_10 = arith.constant 0 : index
    %31 = vector.load %arg2[%29, %30, %c0_9, %c0_10] : memref<1x4x2x128xf32, #tpu.memory_space<vmem>>, vector<1x1x2x128xf32>
    %32 = vector.shape_cast %31 : vector<1x1x2x128xf32> to vector<2x128xf32>
    %33 = arith.index_cast %c0_i32 : i32 to index
    %34 = arith.index_cast %c2_i32 : i32 to index
    %c0_11 = arith.constant 0 : index
    %c0_12 = arith.constant 0 : index
    %35 = vector.load %arg3[%33, %34, %c0_11, %c0_12] : memref<1x4x2x128xf32, #tpu.memory_space<vmem>>, vector<1x1x2x128xf32>
    %36 = vector.shape_cast %35 : vector<1x1x2x128xf32> to vector<2x128xf32>
    %37 = arith.mulf %32, %36 : vector<2x128xf32>
    %38 = arith.addf %24, %37 : vector<2x128xf32>
    %39 = arith.mulf %32, %32 : vector<2x128xf32>
    %40 = arith.addf %26, %39 : vector<2x128xf32>
    %41 = arith.mulf %36, %36 : vector<2x128xf32>
    %42 = arith.addf %28, %41 : vector<2x128xf32>
    %c3_i32 = arith.constant 3 : i32
    %43 = arith.index_cast %c0_i32 : i32 to index
    %44 = arith.index_cast %c3_i32 : i32 to index
    %c0_13 = arith.constant 0 : index
    %c0_14 = arith.constant 0 : index
    %45 = vector.load %arg2[%43, %44, %c0_13, %c0_14] : memref<1x4x2x128xf32, #tpu.memory_space<vmem>>, vector<1x1x2x128xf32>
    %46 = vector.shape_cast %45 : vector<1x1x2x128xf32> to vector<2x128xf32>
    %47 = arith.index_cast %c0_i32 : i32 to index
    %48 = arith.index_cast %c3_i32 : i32 to index
    %c0_15 = arith.constant 0 : index
    %c0_16 = arith.constant 0 : index
    %49 = vector.load %arg3[%47, %48, %c0_15, %c0_16] : memref<1x4x2x128xf32, #tpu.memory_space<vmem>>, vector<1x1x2x128xf32>
    %50 = vector.shape_cast %49 : vector<1x1x2x128xf32> to vector<2x128xf32>
    %51 = arith.mulf %46, %50 : vector<2x128xf32>
    %52 = arith.addf %38, %51 : vector<2x128xf32>
    %53 = arith.mulf %46, %46 : vector<2x128xf32>
    %54 = arith.addf %40, %53 : vector<2x128xf32>
    %55 = arith.mulf %50, %50 : vector<2x128xf32>
    %56 = arith.addf %42, %55 : vector<2x128xf32>
    %c4_i32 = arith.constant 4 : i32
    %57 = vector.broadcast %cst_0 : f32 to vector<2x128xf32>
    %58 = arith.maximumf %54, %57 : vector<2x128xf32>
    %59 = math.rsqrt %58 : vector<2x128xf32>
    %60 = arith.mulf %52, %59 : vector<2x128xf32>
    %61 = vector.broadcast %cst_0 : f32 to vector<2x128xf32>
    %62 = arith.maximumf %56, %61 : vector<2x128xf32>
    %63 = math.rsqrt %62 : vector<2x128xf32>
    %64 = arith.mulf %60, %63 : vector<2x128xf32>
    %65 = arith.addf %0, %64 : vector<2x128xf32>
    %c1_i32_17 = arith.constant 1 : i32
    %66 = vector.shape_cast %65 : vector<2x128xf32> to vector<1x2x128xf32>
    %cst_18 = arith.constant dense<0.000000e+00> : vector<2x128xf32>
    %67 = vector.multi_reduction <add>, %66, %cst_18 [0] : vector<1x2x128xf32> to vector<2x128xf32>
    %c0_19 = arith.constant 0 : index
    %c0_20 = arith.constant 0 : index
    %c0_21 = arith.constant 0 : index
    %c0_22 = arith.constant 0 : index
    %68 = vector.load %arg4[%c0_19, %c0_20, %c0_21, %c0_22] : memref<1x1x2x128xf32, #tpu.memory_space<vmem>>, vector<1x1x2x128xf32>
    %69 = vector.shape_cast %68 : vector<1x1x2x128xf32> to vector<2x128xf32>
    %70 = vector.shape_cast %67 : vector<2x128xf32> to vector<1x1x2x128xf32>
    tpu.vector_store %arg4[%c0_19, %c0_20, %c0_21, %c0_22], %70 {strides = array<i32>} : memref<1x1x2x128xf32, #tpu.memory_space<vmem>>, vector<1x1x2x128xf32>,
    return
  }
  func.func @transform_0(%arg0: i32, %arg1: i32) -> (i32, i32, i32, i32) {
    %c0_i32 = arith.constant 0 : i32
    %c0_i32_0 = arith.constant 0 : i32
    %c0_i32_1 = arith.constant 0 : i32
    return %arg0, %c0_i32, %arg1, %c0_i32_0 : i32, i32, i32, i32
  }
  func.func @transform_1(%arg0: i32, %arg1: i32) -> (i32, i32, i32, i32) {
    %c0_i32 = arith.constant 0 : i32
    %c0_i32_0 = arith.constant 0 : i32
    %c0_i32_1 = arith.constant 0 : i32
    return %arg0, %c0_i32, %arg1, %c0_i32_0 : i32, i32, i32, i32
  }
  func.func @transform_2(%arg0: i32, %arg1: i32) -> (i32, i32, i32, i32) {
    %c0_i32 = arith.constant 0 : i32
    %c0_i32_0 = arith.constant 0 : i32
    %c0_i32_1 = arith.constant 0 : i32
    return %arg0, %arg1, %c0_i32, %c0_i32_0 : i32, i32, i32, i32
  }
}

</mosaic_0001>

<bundles_post_ra>
// kernel: cos_loss.1
= control target key start
LH: loop header
LB: loop body
LE: loop exit
PB: predicated region body
PF: predicated region fallthrough
CT: control target
= control target key end

     0   :  { %s433_s9 = smov 0   ;;  %s435_s10 = smov 0   ;;  %s473_s0 = inlined_call_operand.vmem [shape: f32[2,4,2,128], index: 0, kind: input, shape index: {}]   ;;  %s474_s1 = inlined_call_operand.vmem [shape: f32[2,4,2,128], index: 1, kind: input, shape index: {}]   ;;  %s475_s2 = inlined_call_operand.vmem [shape: f32[2,1,2,128], index: 2, kind: output, shape index: {}]  }
   0x1   :  { %s437_s11 = smov 0  }
   0x2 LB: > { %s24_s12 = sadd.s32 1, %s412_s10  ;;  %p350_p0 = scmp.ge.s32.totalorder %s416_s11, 1  ;;  %s416_s11 = sphi %s437_s11, %s12_s11   ;;  %s412_s10 = sphi %s435_s10, %s477_s10   ;;  %s408_s9 = sphi %s433_s9, %s476_s9  }
   0x3   : > { %p26_p1 = scmp.ge.s32.totalorder %s24_s12, 2  ;;  %p146_p2 = scmp.lt.s32.totalorder %s416_s11, 3 }
   0x5   : > { %s479_s12 = smov (%p26_p1, %s24_s12), 0  ;;  %p147_p3 = pnand %p350_p0, %p146_p2 }
   0x6   : > { %p181_p4 = scmp.lt.s32.totalorder (!%p147_p3), %s408_s9, 1 }
   0x7   : > { %150 = sbr.rel (%p147_p3) target bundleno = 44 (0x2c), region = 28 }
   0xe   : > { %s481_s9 = smov (!%p181_p4, %s408_s9), 1 }
   0xf   : > { %s364_s13 = sshll.u32 %s481_s9, 3  ;;  %s355_s20 = sshll.u32 %s481_s9, 1 }
  0x10   : > { %s188_s16 = scalar_lea.vmem %s473_s0, %s364_s13  ;;  %s196_s19 = scalar_lea.vmem %s474_s1, %s364_s13 }
  0x11   : > { %v204_v0 = vld [vmem:[%s188_s16] sm:$0x3]  ;;  %v356_v2 = vld [vmem:[%s188_s16 + $0x2] sm:$0x3]  ;;  %v358_v7 = vld [vmem:[%s188_s16 + $0x4] sm:$0x3]  ;;  %s203_s23 = scalar_lea.vmem %s475_s2, %s355_s20 }
  0x12   : > { %v205_v1 = vld [vmem:[%s196_s19] sm:$0x3]  ;;  %v208_v3 = vmul.f32 %v204_v0, %v204_v0  ;;  %v357_v5 = vld [vmem:[%s196_s19 + $0x2] sm:$0x3]  ;;  %v218_v6 = vmul.f32 %v356_v2, %v356_v2  ;;  %v359_v8 = vld [vmem:[%s196_s19 + $0x4] sm:$0x3]  ;;  %v228_v10 = vmul.f32 %v358_v7, %v358_v7 }
  0x13   : > { %v210_v4 = vmul.f32 %v205_v1, %v205_v1  ;;  %v220_v9 = vmul.f32 %v357_v5, %v357_v5  ;;  %v360_v11 = vld [vmem:[%s188_s16 + $0x6] sm:$0x3]  ;;  %v230_v14 = vmul.f32 %v359_v8, %v359_v8  ;;  %v206_v19 = vmul.f32 %v205_v1, %v204_v0 }
  0x14   : > { %v361_v12 = vld [vmem:[%s196_s19 + $0x6] sm:$0x3]  ;;  %v219_v13 = vadd.f32 %v218_v6, %v208_v3  ;;  %v238_v15 = vmul.f32 %v360_v11, %v360_v11  ;;  %v216_v20 = vmul.f32 %v357_v5, %v356_v2  ;;  %v226_v26 = vmul.f32 %v359_v8, %v358_v7 }
  0x15   : > { %v221_v16 = vadd.f32 %v220_v9, %v210_v4  ;;  %v240_v17 = vmul.f32 %v361_v12, %v361_v12  ;;  %v236_v29 = vmul.f32 %v361_v12, %v360_v11 }
  0x16   : > { %v229_v18 = vadd.f32 %v228_v10, %v219_v13  ;;  %v217_v25 = vadd.f32 %v216_v20, %v206_v19 }
  0x17   : > { %v231_v21 = vadd.f32 %v230_v14, %v221_v16 }
  0x18   : > { %v239_v22 = vadd.f32 %v238_v15, %v229_v18  ;;  %v227_v28 = vadd.f32 %v226_v26, %v217_v25 }
  0x19   : > { %v241_v23 = vadd.f32 %v240_v17, %v231_v21 }
  0x1a   : > { %v242_v24 = vmax.f32 %v239_v22, 1e-16  ;;  %v237_v30 = vadd.f32 %v236_v29, %v227_v28 }
  0x1b   : > { %v245_v27 = vmax.f32 %v241_v23, 1e-16 }
  0x1c   : > { %390 = vrsqrt.f32 %v242_v24 }
  0x1d   : > { %392 = vrsqrt.f32 %v245_v27 }
  0x26   : > { %v391_v31 = vpop.eup %390 }
  0x27   : > { %v393_v32 = vpop.eup %392  ;;  %v244_v33 = vmul.f32 %v391_v31, %v237_v30 }
  0x29   : > { %v247_v34 = vmul.f32 %v393_v32, %v244_v33 }
  0x2b   : > { %250 = vst [vmem:[%s203_s23] sm:$0x3] %v247_v34 }
  0x2c PF: > { %s12_s11 = sadd.s32 1, %s416_s11   ;;  %s476_s9 = smov %s412_s10 }
  0x2d   : > { %p9_p5 = scmp.ge.s32.totalorder %s12_s11, 4   ;;  %s477_s10 = smov %s479_s12 }
  0x2f   :  { %11 = sbr.rel (!%p9_p5) target bundleno = 2 (0x2), region = 67 }

</bundles_post_ra>
